<compile_context>
chip_gen: v6e
topology: v6e:2x2x1
jax: 0.10.0
libtpu: 0.0.40
codegen_flags: <defaults>
</compile_context>

<pallas_src>
import jax
import jax.numpy as jnp
from jax import lax
from jax.experimental import pallas as pl
from jax.experimental.pallas import tpu as pltpu


def _round_up(a: int, m: int) -> int:
    return (a + m - 1) // m * m


def dist_linear_kernel(x_ref, v_ref, row_scale_ref, col_scale_ref, o_ref, acc_ref,
                       *, precision):
    k = pl.program_id(2)

    @pl.when(k == 0)
    def _():
        acc_ref[...] = jnp.zeros_like(acc_ref)

    # Raw inner products on the MXU, contracting last-vs-last (no transpose of the
    # weight tile), accumulating in f32 across the K grid axis.
    acc_ref[...] += lax.dot_general(
        x_ref[...], v_ref[...],
        dimension_numbers=(((1,), (1,)), ((), ())),
        preferred_element_type=jnp.float32,
        precision=precision,
    )

    @pl.when(k == pl.num_programs(2) - 1)
    def _():
        # Epilogue: per-row input scale (1/(||x||+1e-5)) and per-column weight scale
        # (10*g/||v||), both precomputed in the wrapper; lane-dense store.
        o_ref[...] = (acc_ref[...] * row_scale_ref[...] * col_scale_ref[...]
                      ).astype(o_ref.dtype)


def dist_linear(x, v, g, *, tn=None, to=None, tk=None, precision=None):
    """scores = 10 * (x / (||x||+1e-5)) @ (g * v / ||v||).T  via a tiled Pallas kernel."""
    N, indim = x.shape
    outdim, indim_v = v.shape
    assert indim_v == indim, "v must be (outdim, indim)"

    # --- Hoisted normalization scales (computed once, in f32, by XLA) -------------
    x32 = x.astype(jnp.float32)
    v32 = v.astype(jnp.float32)
    row_scale = 1.0 / (jnp.sqrt(jnp.sum(x32 * x32, axis=1, keepdims=True)) + 1e-5)  # (N, 1)
    g_row = jnp.reshape(g, (1, outdim)).astype(jnp.float32)
    col_scale = (10.0 * g_row) * lax.rsqrt(jnp.sum(v32 * v32, axis=1)[None, :])     # (1, outdim)

    # --- Tile sizes ---------------------------------------------------------------
    sub = {4: 8, 2: 16, 1: 32}.get(jnp.dtype(x.dtype).itemsize, 8)
    if tn is None:
        tn = min(256, _round_up(N, sub))
    if to is None:
        to = min(256, _round_up(outdim, 128))
    k_min = _round_up(indim, 128)
    if tk is None:
        tk = min(512, k_min)          # bounds per-step VMEM independent of indim
    k_pad = _round_up(indim, tk)
    n_pad = _round_up(N, tn)
    o_pad = _round_up(outdim, to)

    # --- Padding (only when needed). Zero padding is safe everywhere: padded v rows
    # give zero dots and col_scale is 0 on padded columns, so padded scores are 0. --
    def pad_to(a, shape):
        if tuple(a.shape) == tuple(shape):
            return a
        return jnp.pad(a, tuple((0, s - d) for d, s in zip(a.shape, shape)))

    x_p = pad_to(x, (n_pad, k_pad))
    v_p = pad_to(v, (o_pad, k_pad))
    rs_p = pad_to(row_scale, (n_pad, 1))
    cs_p = pad_to(col_scale, (1, o_pad))

    n_i, n_j, n_k = n_pad // tn, o_pad // to, k_pad // tk

    flops = 2 * n_pad * o_pad * k_pad + 2 * n_pad * o_pad
    bytes_accessed = int(
        n_j * x_p.size * x_p.dtype.itemsize          # x re-streamed per output tile col
        + n_i * v_p.size * v_p.dtype.itemsize        # v re-streamed per row tile
        + rs_p.size * 4 + cs_p.size * 4
        + n_pad * o_pad * jnp.dtype(x.dtype).itemsize)

    import functools
    kernel = functools.partial(dist_linear_kernel, precision=precision)

    out = pl.pallas_call(
        kernel,
        out_shape=jax.ShapeDtypeStruct((n_pad, o_pad), x.dtype),
        grid_spec=pltpu.PrefetchScalarGridSpec(
            num_scalar_prefetch=0,
            grid=(n_i, n_j, n_k),
            in_specs=[
                pl.BlockSpec((tn, tk), lambda i, j, k: (i, k)),   # x row tile
                pl.BlockSpec((to, tk), lambda i, j, k: (j, k)),   # v col tile
                pl.BlockSpec((tn, 1), lambda i, j, k: (i, 0)),    # row_scale (resident over j,k)
                pl.BlockSpec((1, to), lambda i, j, k: (0, j)),    # col_scale (resident over i,k)
            ],
            out_specs=pl.BlockSpec((tn, to), lambda i, j, k: (i, j)),
            scratch_shapes=[pltpu.VMEM((tn, to), jnp.float32)],   # f32 accumulator
        ),
        compiler_params=pltpu.CompilerParams(
            dimension_semantics=("parallel", "parallel", "arbitrary")),
        cost_estimate=pl.CostEstimate(
            flops=int(flops),
            transcendentals=0,
            bytes_accessed=bytes_accessed),
    )(x_p, v_p, rs_p, cs_p)

    return out[:N, :outdim]


def dist_linear_ref(x, v, g):
    x32 = x.astype(jnp.float32)
    v32 = v.astype(jnp.float32)
    g32 = jnp.reshape(g, (-1, 1)).astype(jnp.float32)
    xn = x32 / (jnp.linalg.norm(x32, axis=1, keepdims=True) + 1e-5)
    w = g32 * v32 / jnp.linalg.norm(v32, axis=1, keepdims=True)
    return 10.0 * jnp.dot(xn, w.T, precision=lax.Precision.HIGHEST)


if __name__ == "__main__":
    key = jax.random.PRNGKey(0)
    kx, kv, kx2, kv2, kx3, kv3 = jax.random.split(key, 6)

    # Tolerance accommodates default single-pass MXU precision for f32 inputs
    # (scores are O(1)-O(10); observed error is ~1e-3 absolute).
    ATOL = RTOL = 5e-2

    # Small case (shapes implied by distLinear(indim, outdim)).
    indim, outdim, N = 32, 16, 8
    bound = 1.0 / jnp.sqrt(jnp.float32(indim))
    v = jax.random.uniform(kv, (outdim, indim), jnp.float32, -bound, bound)
    g = jnp.linalg.norm(v, axis=1, keepdims=True)   # WeightNorm init: g = row norms of v
    x = jax.random.normal(kx, (N, indim), jnp.float32)

    out = jax.block_until_ready(dist_linear(x, v, g))
    ref = dist_linear_ref(x, v, g)
    assert out.shape == (N, outdim)
    assert jnp.allclose(out, ref, atol=ATOL, rtol=RTOL), "small-case mismatch vs reference"

    # Non-aligned multi-tile case: exercises the (i, j) grid, padding and slicing.
    N2, indim2, outdim2 = 300, 200, 300
    bound2 = 1.0 / jnp.sqrt(jnp.float32(indim2))
    v2 = jax.random.uniform(kv2, (outdim2, indim2), jnp.float32, -bound2, bound2)
    g2 = jnp.linalg.norm(v2, axis=1, keepdims=True)
    x2 = jax.random.normal(kx2, (N2, indim2), jnp.float32)

    out2 = jax.block_until_ready(dist_linear(x2, v2, g2))
    ref2 = dist_linear_ref(x2, v2, g2)
    assert out2.shape == (N2, outdim2)
    assert jnp.allclose(out2, ref2, atol=ATOL, rtol=RTOL), "tiled-case mismatch vs reference"

    # Wide-feature case: exercises the K grid axis / f32 accumulator path.
    N3, indim3, outdim3 = 40, 1100, 130
    bound3 = 1.0 / jnp.sqrt(jnp.float32(indim3))
    v3 = jax.random.uniform(kv3, (outdim3, indim3), jnp.float32, -bound3, bound3)
    g3 = jnp.linalg.norm(v3, axis=1, keepdims=True)
    x3 = jax.random.normal(kx3, (N3, indim3), jnp.float32)

    out3 = jax.block_until_ready(dist_linear(x3, v3, g3))
    ref3 = dist_linear_ref(x3, v3, g3)
    assert out3.shape == (N3, outdim3)
    assert jnp.allclose(out3, ref3, atol=ATOL, rtol=RTOL), "K-tiled-case mismatch vs reference"

    print("KERNEL_OK")
</pallas_src>

<mosaic_0001>
module attributes {stable_mosaic.version = 11 : i64} {
  func.func @dist_linear_kernel(%arg0: i32, %arg1: i32, %arg2: i32, %arg3: memref<8x128xf32, #tpu.memory_space<vmem>>, %arg4: memref<128x128xf32, #tpu.memory_space<vmem>>, %arg5: memref<8x1xf32, #tpu.memory_space<vmem>>, %arg6: memref<1x128xf32, #tpu.memory_space<vmem>>, %arg7: memref<8x128xf32, #tpu.memory_space<vmem>>, %arg8: memref<8x128xf32, #tpu.memory_space<vmem>>) attributes {dimension_semantics = [#tpu.dimension_semantics<parallel>, #tpu.dimension_semantics<parallel>, #tpu.dimension_semantics<arbitrary>], iteration_bounds = array<i64: 1, 1, 1>, scalar_prefetch = 0 : i64, scratch_operands = 1 : i64, tpu.core_type = #tpu.core_type<tc>, window_params = [{transform_indices = @transform_0, window_bounds = array<i64: 8, 128>}, {transform_indices = @transform_1, window_bounds = array<i64: 128, 128>}, {transform_indices = @transform_2, window_bounds = array<i64: 8, 1>}, {transform_indices = @transform_3, window_bounds = array<i64: 1, 128>}, {transform_indices = @transform_4, window_bounds = array<i64: 8, 128>}]} {
    %c0_i32 = arith.constant 0 : i32
    %0 = arith.cmpi eq, %arg2, %c0_i32 : i32
    %1 = arith.extui %0 : i1 to i32
    %c0_i32_0 = arith.constant 0 : i32
    %2 = arith.cmpi ne, %1, %c0_i32_0 : i32
    scf.if %2 {
      %cst_10 = arith.constant 0.000000e+00 : f32
      %12 = vector.broadcast %cst_10 : f32 to vector<8x128xf32>
      %c0_11 = arith.constant 0 : index
      %c0_12 = arith.constant 0 : index
      %13 = vector.load %arg8[%c0_11, %c0_12] : memref<8x128xf32, #tpu.memory_space<vmem>>, vector<8x128xf32>
      tpu.vector_store %arg8[%c0_11, %c0_12], %12 {strides = array<i32>} : memref<8x128xf32, #tpu.memory_space<vmem>>, vector<8x128xf32>,
    } else {
    }
    %c0 = arith.constant 0 : index
    %c0_1 = arith.constant 0 : index
    %3 = vector.load %arg8[%c0, %c0_1] : memref<8x128xf32, #tpu.memory_space<vmem>>, vector<8x128xf32>
    %c0_2 = arith.constant 0 : index
    %c0_3 = arith.constant 0 : index
    %4 = vector.load %arg3[%c0_2, %c0_3] : memref<8x128xf32, #tpu.memory_space<vmem>>, vector<8x128xf32>
    %c0_4 = arith.constant 0 : index
    %c0_5 = arith.constant 0 : index
    %5 = vector.load %arg4[%c0_4, %c0_5] : memref<128x128xf32, #tpu.memory_space<vmem>>, vector<128x128xf32>
    %cst = arith.constant dense<0.000000e+00> : vector<8x128xf32>
    %6 = tpu.matmul %4, %5, %cst {dimension_numbers = #tpu.dot_dimension_numbers<[1], [1], [0], [0], [0, 0, 1, 0], [], []>} : vector<8x128xf32>, vector<128x128xf32>, vector<8x128xf32> -> vector<8x128xf32>
    %7 = arith.addf %3, %6 : vector<8x128xf32>
    %c0_6 = arith.constant 0 : index
    %c0_7 = arith.constant 0 : index
    %8 = vector.load %arg8[%c0_6, %c0_7] : memref<8x128xf32, #tpu.memory_space<vmem>>, vector<8x128xf32>
    tpu.vector_store %arg8[%c0_6, %c0_7], %7 {strides = array<i32>} : memref<8x128xf32, #tpu.memory_space<vmem>>, vector<8x128xf32>,
    %c0_i32_8 = arith.constant 0 : i32
    %9 = arith.cmpi eq, %arg2, %c0_i32_8 : i32
    %10 = arith.extui %9 : i1 to i32
    %c0_i32_9 = arith.constant 0 : i32
    %11 = arith.cmpi ne, %10, %c0_i32_9 : i32
    scf.if %11 {
      %c0_10 = arith.constant 0 : index
      %c0_11 = arith.constant 0 : index
      %12 = vector.load %arg8[%c0_10, %c0_11] : memref<8x128xf32, #tpu.memory_space<vmem>>, vector<8x128xf32>
      %c0_12 = arith.constant 0 : index
      %c0_13 = arith.constant 0 : index
      %13 = vector.load %arg5[%c0_12, %c0_13] : memref<8x1xf32, #tpu.memory_space<vmem>>, vector<8x1xf32>
      %14 = vector.broadcast %13 : vector<8x1xf32> to vector<8x128xf32>
      %15 = arith.mulf %12, %14 : vector<8x128xf32>
      %c0_14 = arith.constant 0 : index
      %c0_15 = arith.constant 0 : index
      %16 = vector.load %arg6[%c0_14, %c0_15] : memref<1x128xf32, #tpu.memory_space<vmem>>, vector<1x128xf32>
      %17 = vector.broadcast %16 : vector<1x128xf32> to vector<8x128xf32>
      %18 = arith.mulf %15, %17 : vector<8x128xf32>
      %c0_16 = arith.constant 0 : index
      %c0_17 = arith.constant 0 : index
      %19 = vector.load %arg7[%c0_16, %c0_17] : memref<8x128xf32, #tpu.memory_space<vmem>>, vector<8x128xf32>
      tpu.vector_store %arg7[%c0_16, %c0_17], %18 {strides = array<i32>} : memref<8x128xf32, #tpu.memory_space<vmem>>, vector<8x128xf32>,
    } else {
    }
    return
  }
  func.func @transform_0(%arg0: i32, %arg1: i32, %arg2: i32) -> (i32, i32) {
    %c0_i32 = arith.constant 0 : i32
    return %arg0, %arg2 : i32, i32
  }
  func.func @transform_1(%arg0: i32, %arg1: i32, %arg2: i32) -> (i32, i32) {
    %c0_i32 = arith.constant 0 : i32
    return %arg1, %arg2 : i32, i32
  }
  func.func @transform_2(%arg0: i32, %arg1: i32, %arg2: i32) -> (i32, i32) {
    %c0_i32 = arith.constant 0 : i32
    %c0_i32_0 = arith.constant 0 : i32
    return %arg0, %c0_i32 : i32, i32
  }
  func.func @transform_3(%arg0: i32, %arg1: i32, %arg2: i32) -> (i32, i32) {
    %c0_i32 = arith.constant 0 : i32
    %c0_i32_0 = arith.constant 0 : i32
    return %c0_i32, %arg1 : i32, i32
  }
  func.func @transform_4(%arg0: i32, %arg1: i32, %arg2: i32) -> (i32, i32) {
    %c0_i32 = arith.constant 0 : i32
    return %arg0, %arg1 : i32, i32
  }
}

</mosaic_0001>

<bundles_post_ra>
// kernel: tpu_custom_call.1
= control target key start
LH: loop header
LB: loop body
LE: loop exit
PB: predicated region body
PF: predicated region fallthrough
CT: control target
= control target key end

     0   :  { %9 = vsyncpa [#allocation4], 0  ;;  %s314_s0 = inlined_call_operand.vmem [shape: f32[8,128], index: 0, kind: input, shape index: {}]   ;;  %s315_s1 = inlined_call_operand.hbm [shape: f32[128,128], index: 1, kind: input, shape index: {}]   ;;  %s316_s2 = inlined_call_operand.vmem [shape: f32[8,1], index: 2, kind: input, shape index: {}]   ;;  %s317_s3 = inlined_call_operand.vmem [shape: f32[1,128], index: 3, kind: input, shape index: {}]   ;;  %s318_s4 = inlined_call_operand.hbm [shape: f32[8,128], index: 4, kind: output, shape index: {}]  }
   0x1   :  { %10 = vsyncpa [#allocation5], 0  ;;  %s267_s15 = smov [#allocation3]  }
   0x2   :  { %s18_s16 = sshll.u32 %s267_s15, 4  ;;  %s19_s16 = int_to_ptr.vmem [resolvable:$true] %s18_s16 }
   0x3   :  { %s231_s17 = scalar_lea.vmem %s19_s16, 2048  ;;  %p236_p1 = scmp.lt.s32.totalorder %s19_s16, %s19_s16 }
   0x4   :  { %p232_p0 = scmp.ne.s32.totalorder %s19_s16, %s231_s17  ;;  %p237_p2 = scmp.lt.s32.totalorder %s231_s17, %s231_s17 }
   0x6   :  { %p238_p3 = por %p237_p2, %p236_p1 }
   0x8   :  { %p239_p4 = pnand %p238_p3, %p232_p0 }
   0xa   :  { %242 = shalt.err (!%p239_p4)
}
   0xb   :  { %s268_s18 = smov 128   ;;  %s269_s19 = smov 8  }
   0xc   :  { %24 = dma.hbm_to_vmem [thread:$0]  %s315_s1, 2048, %s19_s16, [#allocation4], %s268_s18, %s268_s18, %s269_s19  }
   0xd   :  { %263 = dma.done.wait [#allocation4], 2048  }
   0xe   :  { %264 = vsyncadd [#allocation4], 4294965248  ;;  %v270_v0 = vmov 0.0   ;;  %vm271_vm0 = vmmov 0   ;;  %v272_v1 = vmov 0   ;;  %v54_v2 = vld [vmem:[#allocation3 + $0x78] sm:$0xff] }
   0xf   :  { %180 = vmatprep.subr.mxu0 %v270_v0  ;;  %212 = vmatprep.mubr.msk.f32.mxu0 %vm271_vm0, %v270_v0  ;;  %v53_v3 = vld [vmem:[#allocation3 + $0x70] sm:$0xff]  ;;  %v131_v4 = vld [vmem:[%s316_s2] sm:$0xff]  ;;  %v52_v5 = vld [vmem:[#allocation3 + $0x68] sm:$0xff]  ;;  %s273_s26 = smov [#allocation6]  }
  0x10   :  { %222 = vset.pattern.permute.xlu0 %v272_v1  ;;  %181 = vmatpush3.xpose.msra.mxu0 %v54_v2  ;;  %v51_v6 = vld [vmem:[#allocation3 + $0x60] sm:$0xff]  ;;  %v50_v7 = vld [vmem:[#allocation3 + $0x58] sm:$0xff]  ;;  %v49_v8 = vld [vmem:[#allocation3 + $0x50] sm:$0xff]  ;;  %s153_s27 = sshll.u32 %s273_s26, 4  ;;  %s154_s27 = int_to_ptr.vmem [resolvable:$true] %s153_s27 }
  0x11   :  { %182 = vmatprep.subr.mxu0 %v270_v0  ;;  %134 = vperm.xlu0 %222, %v131_v4   ;;  %v48_v9 = vld [vmem:[#allocation3 + $0x48] sm:$0xff]  ;;  %v47_v10 = vld [vmem:[#allocation3 + $0x40] sm:$0xff]  ;;  %v46_v11 = vld [vmem:[#allocation3 + $0x38] sm:$0xff]  ;;  %s243_s28 = scalar_lea.vmem %s154_s27, 128  ;;  %p248_p6 = scmp.lt.s32.totalorder %s154_s27, %s154_s27 }
  0x12   :  { %v45_v12 = vld [vmem:[#allocation3 + $0x30] sm:$0xff]  ;;  %v44_v13 = vld [vmem:[#allocation3 + $0x28] sm:$0xff]  ;;  %v43_v14 = vld [vmem:[#allocation3 + $0x20] sm:$0xff]  ;;  %p244_p5 = scmp.ne.s32.totalorder %s154_s27, %s243_s28  ;;  %p249_p7 = scmp.lt.s32.totalorder %s243_s28, %s243_s28 }
  0x13   :  { %v42_v15 = vld [vmem:[#allocation3 + $0x18] sm:$0xff]  ;;  %v41_v16 = vld [vmem:[#allocation3 + $0x10] sm:$0xff]  ;;  %v40_v17 = vld [vmem:[#allocation3 + $0x8] sm:$0xff] }
  0x14   :  { %183 = vmatpush3.xpose.msra.mxu0 %v53_v3  ;;  %v39_v18 = vld [vmem:[#allocation3] sm:$0xff]  ;;  %p250_p8 = por %p249_p7, %p248_p6 }
  0x15   :  { %184 = vmatprep.subr.mxu0 %v270_v0  ;;  %v38_v19 = vld [vmem:[%s314_s0] sm:$0xff] }
  0x16   :  { %v162_v22 = vld [vmem:[%s317_s3] ss:$0 sm:$0xff]  ;;  %p251_p9 = pnand %p250_p8, %p244_p5 }
  0x18   :  { %185 = vmatpush3.xpose.msra.mxu0 %v52_v5 }
  0x19   :  { %186 = vmatprep.subr.mxu0 %v270_v0 }
  0x1c   :  { %187 = vmatpush3.xpose.msra.mxu0 %v51_v6 }
  0x1d   :  { %188 = vmatprep.subr.mxu0 %v270_v0 }
  0x20   :  { %189 = vmatpush3.xpose.msra.mxu0 %v50_v7 }
  0x21   :  { %190 = vmatprep.subr.mxu0 %v270_v0 }
  0x24   :  { %191 = vmatpush3.xpose.msra.mxu0 %v49_v8 }
  0x25   :  { %192 = vmatprep.subr.mxu0 %v270_v0 }
  0x28   :  { %193 = vmatpush3.xpose.msra.mxu0 %v48_v9 }
  0x29   :  { %194 = vmatprep.subr.mxu0 %v270_v0 }
  0x2c   :  { %195 = vmatpush3.xpose.msra.mxu0 %v47_v10 }
  0x2d   :  { %196 = vmatprep.subr.mxu0 %v270_v0 }
  0x30   :  { %197 = vmatpush3.xpose.msra.mxu0 %v46_v11 }
  0x31   :  { %198 = vmatprep.subr.mxu0 %v270_v0 }
  0x34   :  { %199 = vmatpush3.xpose.msra.mxu0 %v45_v12 }
  0x35   :  { %200 = vmatprep.subr.mxu0 %v270_v0 }
  0x38   :  { %201 = vmatpush3.xpose.msra.mxu0 %v44_v13 }
  0x39   :  { %202 = vmatprep.subr.mxu0 %v270_v0 }
  0x3c   :  { %203 = vmatpush3.xpose.msra.mxu0 %v43_v14 }
  0x3d   :  { %204 = vmatprep.subr.mxu0 %v270_v0 }
  0x40   :  { %205 = vmatpush3.xpose.msra.mxu0 %v42_v15 }
  0x41   :  { %206 = vmatprep.subr.mxu0 %v270_v0 }
  0x44   :  { %207 = vmatpush3.xpose.msra.mxu0 %v41_v16 }
  0x45   :  { %208 = vmatprep.subr.mxu0 %v270_v0 }
  0x48   :  { %209 = vmatpush3.xpose.msra.mxu0 %v40_v17 }
  0x49   :  { %210 = vmatprep.subr.mxu0 %v270_v0 }
  0x4c   :  { %211 = vmatpush3.xpose.msra.mxu0 %v39_v18 }
  0x4f   :  { %213 = vmatmul.mubr.f32.vlgmr.msra.gmra.mxu0 %v38_v19 }
  0x8c   :  { %v135_v20 = vpop.permute.xlu0 %134 }
 0x10f   :  { %v121_v21 = vpop.f32.mrf.mxu0 }
 0x110   :  { %v137_v23 = vmul.f32 %v135_v20, %v121_v21 }
 0x111   :  { %v214_v24 = vpop.f32.mrf.mxu0 }
 0x112   :  { %v145_v25 = vmul.f32 %v162_v22, %v137_v23 }
 0x114   :  { %146 = vst [vmem:[#allocation6] sm:$0xff] %v145_v25 }
 0x115   :  { %254 = shalt.err (!%p251_p9)
}
 0x116   :  { %156 = dma.vmem_to_hbm [thread:$0]  %s154_s27, 128, %s318_s4, [#allocation5]  }
 0x117   :  { %265 = dma.done.wait [#allocation5], 128  }
 0x118   :  { %266 = vsyncadd [#allocation5], 4294967168 }
 0x119   :  { %160 = vsyncpa [#allocation4], 1 }
 0x11a   :  { %161 = vsyncpa [#allocation5], 1 }

</bundles_post_ra>
